<compile_context>
chip_gen: v6e
topology: v6e:2x2x1
jax: 0.10.0
libtpu: 0.0.40
codegen_flags: <defaults>
</compile_context>

<pallas_src>
import functools

import jax
import jax.numpy as jnp
from jax.experimental import pallas as pl
from jax.experimental.pallas import tpu as pltpu

LANE = 128          # TPU lane width (last dim of the slab)


def _tpu_generation():
    """Best-effort TPU generation from the device kind string (0 if unknown)."""
    try:
        kind = jax.devices()[0].device_kind.lower()
    except Exception:
        return 0
    for g in range(9, 1, -1):
        if f"v{g}" in kind:
            return g
    return 0


def _sublane_multiple(dtype):
    """Sublane tile granularity: 8 for 32-bit, 16 for 16-bit, 32 for 8-bit."""
    return 8 * max(1, 4 // jnp.dtype(dtype).itemsize)


def _dice_kernel(x_ref, t_ref, inter_ref, st_ref, *,
                 tile_r, rows_valid, steps_per_core, need_mask):
    """Accumulate per-(sublane,lane) partials of sigmoid(x)*t and sigmoid(x)+t."""
    p = pl.program_id(0)            # core axis (megacore split; size 1 off-v7x)
    i = pl.program_id(1)            # reduction axis (sequential)

    @pl.when(i == 0)
    def _():
        inter_ref[...] = jnp.zeros_like(inter_ref)
        st_ref[...] = jnp.zeros_like(st_ref)

    x = x_ref[...].astype(jnp.float32)          # (tile_r, LANE)
    t = t_ref[...].astype(jnp.float32)
    # sigmoid(x) = 0.5*(tanh(x/2)+1): a single EUP push per vreg (vs exp+rcp).
    s = 0.5 * (jnp.tanh(0.5 * x) + 1.0)

    def accumulate(sv, tv):
        # Fold the tile onto an (8, LANE) vreg footprint with pure VPU adds;
        # the cross-lane/sublane reduction is deferred to the wrapper (once).
        inter3 = (sv * tv).reshape(tile_r // 8, 8, LANE)
        st3 = (sv + tv).reshape(tile_r // 8, 8, LANE)
        inter_ref[...] += jnp.sum(inter3, axis=0, keepdims=True)
        st_ref[...] += jnp.sum(st3, axis=0, keepdims=True)

    if not need_mask:
        accumulate(s, t)
    else:
        base_row = (p * steps_per_core + i) * tile_r

        @pl.when(base_row + tile_r <= rows_valid)
        def _():
            # Hot path: block is fully in-bounds, no mask work at all.
            accumulate(s, t)

        @pl.when(base_row + tile_r > rows_valid)
        def _():
            # Edge block (partial last block / clamped duplicate block).
            row_ids = base_row + jax.lax.broadcasted_iota(
                jnp.int32, (tile_r, LANE), 0)
            valid = row_ids < rows_valid
            # Select (not multiply) so garbage/NaN in OOB rows never propagates.
            accumulate(jnp.where(valid, s, jnp.float32(0.0)),
                       jnp.where(valid, t, jnp.float32(0.0)))


def dice_loss(inputs, targets, smooth=1e-6):
    """Matches torch DiceLoss.forward semantics; returns a scalar f32 loss."""
    x = inputs.reshape(-1)          # keep native dtype; cast inside the kernel
    t = targets.reshape(-1)
    n = x.shape[0]

    rows = n // LANE
    n_main = rows * LANE

    # Sub-lane tail (< 128 elements): folded in with plain JAX.
    # TODO(synk): when n % 128 != 0 the x[:n_main]/t[:n_main] slices feeding
    # pallas_call are materialized by XLA (extra HBM copy of both inputs);
    # avoiding it needs 1-D blocks + an in-kernel sublane retile, which is not
    # a layout-preserving reshape on TPU, so the copy is accepted for now.
    inter_tail = jnp.float32(0.0)
    st_tail = jnp.float32(0.0)
    if n_main < n:
        s_tail = jax.nn.sigmoid(x[n_main:].astype(jnp.float32))
        t_tail = t[n_main:].astype(jnp.float32)
        inter_tail = jnp.sum(s_tail * t_tail)
        st_tail = jnp.sum(s_tail) + jnp.sum(t_tail)

    if rows == 0:
        # Fewer than 128 elements total: nothing for the kernel to do.
        inter_total = inter_tail
        st_total = st_tail
    else:
        if n_main < n:
            x2 = x[:n_main].reshape(rows, LANE)
            t2 = t[:n_main].reshape(rows, LANE)
        else:
            x2 = x.reshape(rows, LANE)      # free reshape, no copy
            t2 = t.reshape(rows, LANE)

        gen = _tpu_generation()
        is_v7plus = gen >= 7
        # Bigger tiles on v7x: its faster HBM makes the fixed per-step cost
        # dominant sooner.  2 inputs x 2 buffers x block stays only a few MiB.
        max_tile_r = 2048 if is_v7plus else 1024

        g = max(_sublane_multiple(x2.dtype), _sublane_multiple(t2.dtype))
        tile_r = max(g, min(max_tile_r, ((rows + g - 1) // g) * g))
        total_blocks = pl.cdiv(rows, tile_r)
        # Megacore split only on v7x (2 TensorCores/chip).  On v5e/v6e it adds
        # zero parallelism but wastes a duplicate block's HBM read + masking.
        num_cores = 2 if (is_v7plus and total_blocks >= 2) else 1
        steps = pl.cdiv(total_blocks, num_cores)
        need_mask = (num_cores * steps * tile_r) != rows

        def in_map(p, i):
            blk = p * steps + i
            if num_cores * steps != total_blocks:
                # Clamped duplicate blocks are fully zeroed by the row mask.
                blk = jnp.minimum(blk, total_blocks - 1)
            return (blk, 0)

        def out_map(p, i):
            return (p, 0, 0)

        kernel = functools.partial(
            _dice_kernel, tile_r=tile_r, rows_valid=rows,
            steps_per_core=steps, need_mask=need_mask)

        # TODO(synk): on v7x, verify with a profile that the leading "parallel"
        # axis really shards across both TensorCores; if only one TC is busy,
        # switch that axis to pltpu.CORE_PARALLEL.
        inter_acc, st_acc = pl.pallas_call(
            kernel,
            out_shape=(
                jax.ShapeDtypeStruct((num_cores, 8, LANE), jnp.float32),
                jax.ShapeDtypeStruct((num_cores, 8, LANE), jnp.float32),
            ),
            grid_spec=pltpu.PrefetchScalarGridSpec(
                num_scalar_prefetch=0,
                grid=(num_cores, steps),
                in_specs=[pl.BlockSpec((tile_r, LANE), in_map),
                          pl.BlockSpec((tile_r, LANE), in_map)],
                out_specs=(
                    pl.BlockSpec((1, 8, LANE), out_map),
                    pl.BlockSpec((1, 8, LANE), out_map),
                ),
            ),
            compiler_params=pltpu.CompilerParams(
                dimension_semantics=("parallel", "arbitrary")),
        )(x2, t2)

        inter_total = jnp.sum(inter_acc) + inter_tail
        st_total = jnp.sum(st_acc) + st_tail

    smooth = jnp.float32(smooth)
    dice = (2.0 * inter_total + smooth) / (st_total + smooth)
    return jnp.float32(1.0) - dice


def _dice_loss_ref(inputs, targets, smooth=1e-6):
    x = jax.nn.sigmoid(inputs.astype(jnp.float32)).reshape(-1)
    t = targets.astype(jnp.float32).reshape(-1)
    inter = jnp.sum(x * t)
    dice = (2.0 * inter + smooth) / (jnp.sum(x) + jnp.sum(t) + smooth)
    return 1.0 - dice


if __name__ == "__main__":
    key = jax.random.PRNGKey(0)
    loss_fn = jax.jit(dice_loss)

    # (2,4,16,16): single small block; (3,5,7,11): partial block + <128 lane
    # tail (wrapper path); (4,4,96,96): full block + gated-mask edge block;
    # (2,3,256,256): 3 full-size blocks streamed through the pipeline.
    shapes = [(2, 4, 16, 16), (3, 5, 7, 11), (4, 4, 96, 96), (2, 3, 256, 256)]
    for shp in shapes:
        key, k1, k2 = jax.random.split(key, 3)
        x = jax.random.normal(k1, shp, dtype=jnp.float32)
        tgt = (jax.random.uniform(k2, shp) > 0.5).astype(jnp.float32)
        loss = jax.block_until_ready(loss_fn(x, tgt))
        ref = jax.block_until_ready(_dice_loss_ref(x, tgt))
        assert jnp.allclose(loss, ref, atol=1e-5, rtol=1e-5), (shp, loss, ref)

    print("KERNEL_OK")
</pallas_src>

<mosaic_0001>
module attributes {stable_mosaic.version = 11 : i64} {
  func.func @_dice_kernel(%arg0: i32, %arg1: i32, %arg2: memref<16x128xf32, #tpu.memory_space<vmem>>, %arg3: memref<16x128xf32, #tpu.memory_space<vmem>>, %arg4: memref<1x8x128xf32, #tpu.memory_space<vmem>>, %arg5: memref<1x8x128xf32, #tpu.memory_space<vmem>>) attributes {dimension_semantics = [#tpu.dimension_semantics<parallel>, #tpu.dimension_semantics<arbitrary>], iteration_bounds = array<i64: 1, 1>, scalar_prefetch = 0 : i64, scratch_operands = 0 : i64, tpu.core_type = #tpu.core_type<tc>, window_params = [{transform_indices = @transform_0, window_bounds = array<i64: 16, 128>}, {transform_indices = @transform_1, window_bounds = array<i64: 16, 128>}, {transform_indices = @transform_2, window_bounds = array<i64: 1, 8, 128>}, {transform_indices = @transform_3, window_bounds = array<i64: 1, 8, 128>}]} {
    %c0_i32 = arith.constant 0 : i32
    %0 = arith.cmpi eq, %arg1, %c0_i32 : i32
    %1 = arith.extui %0 : i1 to i32
    %c0_i32_0 = arith.constant 0 : i32
    %2 = arith.cmpi ne, %1, %c0_i32_0 : i32
    scf.if %2 {
      %cst_20 = arith.constant 0.000000e+00 : f32
      %26 = vector.broadcast %cst_20 : f32 to vector<1x8x128xf32>
      %c0_21 = arith.constant 0 : index
      %c0_22 = arith.constant 0 : index
      %c0_23 = arith.constant 0 : index
      %27 = vector.load %arg4[%c0_21, %c0_22, %c0_23] : memref<1x8x128xf32, #tpu.memory_space<vmem>>, vector<1x8x128xf32>
      tpu.vector_store %arg4[%c0_21, %c0_22, %c0_23], %26 {strides = array<i32>} : memref<1x8x128xf32, #tpu.memory_space<vmem>>, vector<1x8x128xf32>,
      %cst_24 = arith.constant 0.000000e+00 : f32
      %28 = vector.broadcast %cst_24 : f32 to vector<1x8x128xf32>
      %c0_25 = arith.constant 0 : index
      %c0_26 = arith.constant 0 : index
      %c0_27 = arith.constant 0 : index
      %29 = vector.load %arg5[%c0_25, %c0_26, %c0_27] : memref<1x8x128xf32, #tpu.memory_space<vmem>>, vector<1x8x128xf32>
      tpu.vector_store %arg5[%c0_25, %c0_26, %c0_27], %28 {strides = array<i32>} : memref<1x8x128xf32, #tpu.memory_space<vmem>>, vector<1x8x128xf32>,
    } else {
    }
    %c0 = arith.constant 0 : index
    %c0_1 = arith.constant 0 : index
    %3 = vector.load %arg2[%c0, %c0_1] : memref<16x128xf32, #tpu.memory_space<vmem>>, vector<16x128xf32>
    %c0_2 = arith.constant 0 : index
    %c0_3 = arith.constant 0 : index
    %4 = vector.load %arg3[%c0_2, %c0_3] : memref<16x128xf32, #tpu.memory_space<vmem>>, vector<16x128xf32>
    %cst = arith.constant 5.000000e-01 : f32
    %5 = vector.broadcast %cst : f32 to vector<16x128xf32>
    %6 = arith.mulf %5, %3 : vector<16x128xf32>
    %7 = math.tanh %6 : vector<16x128xf32>
    %cst_4 = arith.constant 1.000000e+00 : f32
    %8 = vector.broadcast %cst_4 : f32 to vector<16x128xf32>
    %9 = arith.addf %7, %8 : vector<16x128xf32>
    %cst_5 = arith.constant 5.000000e-01 : f32
    %10 = vector.broadcast %cst_5 : f32 to vector<16x128xf32>
    %11 = arith.mulf %10, %9 : vector<16x128xf32>
    %12 = arith.mulf %11, %4 : vector<16x128xf32>
    %13 = vector.shape_cast %12 : vector<16x128xf32> to vector<2x8x128xf32>
    %14 = arith.addf %11, %4 : vector<16x128xf32>
    %15 = vector.shape_cast %14 : vector<16x128xf32> to vector<2x8x128xf32>
    %c0_6 = arith.constant 0 : index
    %c0_7 = arith.constant 0 : index
    %c0_8 = arith.constant 0 : index
    %16 = vector.load %arg4[%c0_6, %c0_7, %c0_8] : memref<1x8x128xf32, #tpu.memory_space<vmem>>, vector<1x8x128xf32>
    %cst_9 = arith.constant dense<0.000000e+00> : vector<8x128xf32>
    %17 = vector.multi_reduction <add>, %13, %cst_9 [0] : vector<2x8x128xf32> to vector<8x128xf32>
    %18 = vector.shape_cast %17 : vector<8x128xf32> to vector<1x8x128xf32>
    %19 = arith.addf %16, %18 : vector<1x8x128xf32>
    %c0_10 = arith.constant 0 : index
    %c0_11 = arith.constant 0 : index
    %c0_12 = arith.constant 0 : index
    %20 = vector.load %arg4[%c0_10, %c0_11, %c0_12] : memref<1x8x128xf32, #tpu.memory_space<vmem>>, vector<1x8x128xf32>
    tpu.vector_store %arg4[%c0_10, %c0_11, %c0_12], %19 {strides = array<i32>} : memref<1x8x128xf32, #tpu.memory_space<vmem>>, vector<1x8x128xf32>,
    %c0_13 = arith.constant 0 : index
    %c0_14 = arith.constant 0 : index
    %c0_15 = arith.constant 0 : index
    %21 = vector.load %arg5[%c0_13, %c0_14, %c0_15] : memref<1x8x128xf32, #tpu.memory_space<vmem>>, vector<1x8x128xf32>
    %cst_16 = arith.constant dense<0.000000e+00> : vector<8x128xf32>
    %22 = vector.multi_reduction <add>, %15, %cst_16 [0] : vector<2x8x128xf32> to vector<8x128xf32>
    %23 = vector.shape_cast %22 : vector<8x128xf32> to vector<1x8x128xf32>
    %24 = arith.addf %21, %23 : vector<1x8x128xf32>
    %c0_17 = arith.constant 0 : index
    %c0_18 = arith.constant 0 : index
    %c0_19 = arith.constant 0 : index
    %25 = vector.load %arg5[%c0_17, %c0_18, %c0_19] : memref<1x8x128xf32, #tpu.memory_space<vmem>>, vector<1x8x128xf32>
    tpu.vector_store %arg5[%c0_17, %c0_18, %c0_19], %24 {strides = array<i32>} : memref<1x8x128xf32, #tpu.memory_space<vmem>>, vector<1x8x128xf32>,
    return
  }
  func.func @transform_0(%arg0: i32, %arg1: i32) -> (i32, i32) {
    %c1_i32 = arith.constant 1 : i32
    %0 = arith.muli %arg0, %c1_i32 : i32
    %1 = arith.addi %0, %arg1 : i32
    %c0_i32 = arith.constant 0 : i32
    %c0_i32_0 = arith.constant 0 : i32
    return %1, %c0_i32 : i32, i32
  }
  func.func @transform_1(%arg0: i32, %arg1: i32) -> (i32, i32) {
    %c1_i32 = arith.constant 1 : i32
    %0 = arith.muli %arg0, %c1_i32 : i32
    %1 = arith.addi %0, %arg1 : i32
    %c0_i32 = arith.constant 0 : i32
    %c0_i32_0 = arith.constant 0 : i32
    return %1, %c0_i32 : i32, i32
  }
  func.func @transform_2(%arg0: i32, %arg1: i32) -> (i32, i32, i32) {
    %c0_i32 = arith.constant 0 : i32
    %c0_i32_0 = arith.constant 0 : i32
    %c0_i32_1 = arith.constant 0 : i32
    return %arg0, %c0_i32, %c0_i32_0 : i32, i32, i32
  }
  func.func @transform_3(%arg0: i32, %arg1: i32) -> (i32, i32, i32) {
    %c0_i32 = arith.constant 0 : i32
    %c0_i32_0 = arith.constant 0 : i32
    %c0_i32_1 = arith.constant 0 : i32
    return %arg0, %c0_i32, %c0_i32_0 : i32, i32, i32
  }
}

</mosaic_0001>

<bundles_post_ra>
// kernel: dice_loss.1
= control target key start
LH: loop header
LB: loop body
LE: loop exit
PB: predicated region body
PF: predicated region fallthrough
CT: control target
= control target key end

     0   :  { %s150_s0 = inlined_call_operand.vmem [shape: f32[16,128], index: 0, kind: input, shape index: {}]   ;;  %s151_s1 = inlined_call_operand.vmem [shape: f32[16,128], index: 1, kind: input, shape index: {}]   ;;  %s152_s2 = inlined_call_operand.vmem [shape: f32[1,8,128], index: 2, kind: output, shape index: {0}]   ;;  %s153_s3 = inlined_call_operand.vmem [shape: f32[1,8,128], index: 3, kind: output, shape index: {1}]  }
   0x1   :  { %v63_v0 = vld [vmem:[%s150_s0] sm:$0xff]  ;;  %v64_v1 = vld [vmem:[%s150_s0 + $0x8] sm:$0xff] }
   0x2   :  { %v67_v2 = vmul.f32 0.5, %v63_v0  ;;  %v68_v3 = vmul.f32 0.5, %v64_v1  ;;  %v65_v7 = vld [vmem:[%s151_s1] sm:$0xff]  ;;  %v66_v9 = vld [vmem:[%s151_s1 + $0x8] sm:$0xff] }
   0x4   :  { %108 = vtanh.f32 %v67_v2 }
   0x5   :  { %110 = vtanh.f32 %v68_v3 }
  0x11   :  { %v109_v4 = vpop.eup %108 }
  0x12   :  { %v111_v5 = vpop.eup %110  ;;  %v71_v6 = vadd.f32 1.0, %v109_v4 }
  0x13   :  { %v72_v8 = vadd.f32 1.0, %v111_v5 }
  0x14   :  { %v73_v10 = vmul.f32 0.5, %v71_v6 }
  0x15   :  { %v74_v11 = vmul.f32 0.5, %v72_v8 }
  0x16   :  { %v75_v12 = vmul.f32 %v73_v10, %v65_v7  ;;  %v77_v13 = vadd.f32 %v73_v10, %v65_v7 }
  0x17   :  { %v76_v14 = vmul.f32 %v74_v11, %v66_v9  ;;  %v78_v15 = vadd.f32 %v74_v11, %v66_v9 }
  0x19   :  { %v80_v16 = vadd.f32 %v76_v14, %v75_v12  ;;  %v84_v17 = vadd.f32 %v78_v15, %v77_v13 }
  0x1b   :  { %82 = vst [vmem:[%s152_s2] sm:$0xff] %v80_v16  ;;  %86 = vst [vmem:[%s153_s3] sm:$0xff] %v84_v17 }

</bundles_post_ra>
